<compile_context>
chip_gen: v7x
topology: tpu7x:2x2x1
jax: 0.10.0
libtpu: 0.0.40
codegen_flags: <defaults>
</compile_context>

<pallas_src>
import functools

import jax
import jax.numpy as jnp
from jax.experimental import pallas as pl
from jax.experimental.pallas import tpu as pltpu

_MASK = -1e30  # finite additive mask for non-edges (keeps online softmax NaN-free)


def _round_up(x, m):
    return (x + m - 1) // m * m


# --------------------------------------------------------------------------
# Kernel A (per row tile): xw = x @ W, alpha_src^T, alpha_dst.
# --------------------------------------------------------------------------
def _gat_linear_kernel(x_ref, w_ref, asrcm_ref, adstm_ref,
                       xw_ref, asrcT_ref, adst_ref):
    # x tile [TM, F_in_pad] f32 -> bf16 for the MXU; W is already bf16.
    xw = jnp.dot(x_ref[...].astype(jnp.bfloat16), w_ref[...],
                 preferred_element_type=jnp.float32)            # [TM, F_pad] f32
    xw_ref[...] = xw.astype(jnp.bfloat16)                       # bf16 operand for kernel B
    # alpha_src emitted transposed: [H, TM] = asrc_mat[H, F_pad] . xw[TM, F_pad]^T
    asrcT_ref[...] = jax.lax.dot_general(
        asrcm_ref[...], xw, (((1,), (1,)), ((), ())),
        preferred_element_type=jnp.float32)
    # alpha_dst: [TM, H]
    adst_ref[...] = jnp.dot(xw, adstm_ref[...],
                            preferred_element_type=jnp.float32)


# --------------------------------------------------------------------------
# Kernel B (grid = row tiles x column tiles): online-softmax attention + agg.
# --------------------------------------------------------------------------
def _gat_attn_kernel(nnz_ref, adj_ref, xw_ref, asrcT_ref, adst_ref, bias_ref,
                     out_ref, m_ref, l_ref, acc_ref,
                     *, heads, f_out, concat, apply_elu):
    i = pl.program_id(0)
    j = pl.program_id(1)
    n_j = pl.num_programs(1)

    @pl.when(j == 0)
    def _init():
        m_ref[...] = jnp.full(m_ref.shape, _MASK, dtype=jnp.float32)
        l_ref[...] = jnp.zeros(l_ref.shape, dtype=jnp.float32)
        acc_ref[...] = jnp.zeros(acc_ref.shape, dtype=jnp.float32)

    @pl.when(nnz_ref[i * n_j + j] > 0)          # skip all-zero adjacency tiles
    def _update():
        # Additive edge bias built once per tile from the int8 compare.
        edge_bias = jnp.where(adj_ref[...] != 0, 0.0, _MASK)    # [TM, TK] f32
        xw = xw_ref[...]                                        # [TK, F_pad] bf16
        asrcT = asrcT_ref[...]                                  # [H, TK]   f32
        adst = adst_ref[...]                                    # [TM, H]   f32

        for h in range(heads):                                  # compile-time loop
            hs = h * f_out
            # e[d, s] = alpha_dst[d, h] + alpha_src[s, h]   (VPU broadcasts)
            e = adst[:, h:h + 1] + asrcT[h:h + 1, :]            # [TM, TK]
            e = jnp.maximum(e, 0.2 * e)                         # LeakyReLU(0.2)
            e = e + edge_bias                                   # mask non-edges
            m_prev = m_ref[:, h:h + 1]
            m_new = jnp.maximum(m_prev, jnp.max(e, axis=-1, keepdims=True))
            scale = jnp.exp(m_prev - m_new)                     # [TM, 1]
            p = jnp.exp(e - m_new)                              # [TM, TK] f32
            l_ref[:, h:h + 1] = (scale * l_ref[:, h:h + 1]
                                 + jnp.sum(p, axis=-1, keepdims=True))
            agg = jnp.dot(p.astype(jnp.bfloat16), xw[:, hs:hs + f_out],
                          preferred_element_type=jnp.float32)   # [TM, F_out]
            acc_ref[:, hs:hs + f_out] = scale * acc_ref[:, hs:hs + f_out] + agg
            m_ref[:, h:h + 1] = m_new

    @pl.when(j == n_j - 1)
    def _finalize():
        # Clamp l: fully-skipped (all-padded) row tiles keep l == 0.
        inv = pl.reciprocal(jnp.maximum(l_ref[...], 1e-30), approx=True)  # [TM, H]
        acc = acc_ref[...]
        if concat:
            for h in range(heads):
                hs = h * f_out
                acc_ref[:, hs:hs + f_out] = acc[:, hs:hs + f_out] * inv[:, h:h + 1]
            out = acc_ref[...]                                   # [TM, out_pad]
        else:
            # Only heads == 1 reaches here (asserted on host); padded cols stay 0.
            out = acc * inv[:, 0:1]
        out = out + bias_ref[...]                                # [1, out_pad] bcast
        if apply_elu:                                            # fused F.elu (alpha=1)
            out = jnp.where(out > 0, out, jnp.expm1(jnp.minimum(out, 0.0)))
        out_ref[...] = out                                       # single lane-dense store


# --------------------------------------------------------------------------
# Host-side wrapper: one GATConv layer = kernel A + kernel B.
# --------------------------------------------------------------------------
def _embed_att_rows(att, f_pad):
    """att: [H, F_out] -> [H, f_pad] with att[h] at columns h*F_out:(h+1)*F_out."""
    h_num, f_out = att.shape
    m = jnp.zeros((h_num, f_pad), jnp.float32)
    for h in range(h_num):
        m = m.at[h, h * f_out:(h + 1) * f_out].set(att[h])
    return m


def gat_conv(x, w, att_src, att_dst, bias, adj, tile_nnz, *, heads, f_out,
             concat, apply_elu, tm=128, tk=512):
    n_pad, in_dim = x.shape
    assert n_pad % tm == 0 and n_pad % tk == 0
    if not concat:
        assert heads == 1, "non-concat path implemented for heads==1 (GAT.conv2)"
    f_real = heads * f_out
    f_pad = _round_up(f_real, 128)
    out_dim = f_real if concat else f_out
    out_pad = _round_up(out_dim, 128)
    assert out_pad == f_pad

    w_pad = jnp.zeros((in_dim, f_pad), jnp.float32)
    w_pad = w_pad.at[:w.shape[0], :f_real].set(w).astype(jnp.bfloat16)
    asrc_mat = _embed_att_rows(att_src, f_pad)                 # [H, F_pad]
    adst_mat = _embed_att_rows(att_dst, f_pad).T               # [F_pad, H]
    bias_pad = jnp.zeros((1, out_pad), jnp.float32).at[:, :out_dim].set(
        bias[:, :out_dim])

    # ---- Kernel A: linear + attention projections ----
    grid_a = (n_pad // tm,)
    vmem_a = 2 * (tm * in_dim * 4 + in_dim * f_pad * 2 + heads * f_pad * 4
                  + f_pad * heads * 4 + tm * f_pad * 2 + heads * tm * 4
                  + tm * heads * 4) + 4 * tm * f_pad * 4 + (8 << 20)
    vmem_a = min(max(vmem_a, 32 << 20), 56 << 20)
    xw, asrcT, adst = pl.pallas_call(
        _gat_linear_kernel,
        grid=grid_a,
        in_specs=[
            pl.BlockSpec((tm, in_dim), lambda i: (i, 0)),      # x row tile
            pl.BlockSpec((in_dim, f_pad), lambda i: (0, 0)),   # W (bf16, constant)
            pl.BlockSpec((heads, f_pad), lambda i: (0, 0)),    # att_src block-diag
            pl.BlockSpec((f_pad, heads), lambda i: (0, 0)),    # att_dst block-diag
        ],
        out_specs=[
            pl.BlockSpec((tm, f_pad), lambda i: (i, 0)),       # xw (bf16)
            pl.BlockSpec((heads, tm), lambda i: (0, i)),       # alpha_src^T
            pl.BlockSpec((tm, heads), lambda i: (i, 0)),       # alpha_dst
        ],
        out_shape=[
            jax.ShapeDtypeStruct((n_pad, f_pad), jnp.bfloat16),
            jax.ShapeDtypeStruct((heads, n_pad), jnp.float32),
            jax.ShapeDtypeStruct((n_pad, heads), jnp.float32),
        ],
        compiler_params=pltpu.CompilerParams(
            dimension_semantics=("parallel",), vmem_limit_bytes=vmem_a),
    )(x, w_pad, asrc_mat, adst_mat)

    # ---- Kernel B: online-softmax attention + aggregation over column tiles ----
    grid_b = (n_pad // tm, n_pad // tk)
    vmem_b = (2 * (tm * tk * 1 + tk * f_pad * 2 + heads * tk * 4
                   + tm * heads * 4 + out_pad * 4 + tm * out_pad * 4)
              + (2 * tm * heads + tm * f_pad) * 4
              + 4 * tm * tk * 4 + (8 << 20))
    vmem_b = min(max(vmem_b, 32 << 20), 56 << 20)
    kernel_b = functools.partial(_gat_attn_kernel, heads=heads, f_out=f_out,
                                 concat=concat, apply_elu=apply_elu)
    out = pl.pallas_call(
        kernel_b,
        grid_spec=pltpu.PrefetchScalarGridSpec(
            num_scalar_prefetch=1,
            grid=grid_b,
            in_specs=[
                pl.BlockSpec((tm, tk), lambda i, j, nnz: (i, j)),      # adj tile int8
                pl.BlockSpec((tk, f_pad), lambda i, j, nnz: (j, 0)),   # xw col tile bf16
                pl.BlockSpec((heads, tk), lambda i, j, nnz: (0, j)),   # alpha_src^T col tile
                pl.BlockSpec((tm, heads), lambda i, j, nnz: (i, 0)),   # alpha_dst row tile
                pl.BlockSpec((1, out_pad), lambda i, j, nnz: (0, 0)),  # bias
            ],
            out_specs=pl.BlockSpec((tm, out_pad), lambda i, j, nnz: (i, 0)),
            scratch_shapes=[
                pltpu.VMEM((tm, heads), jnp.float32),   # running max m
                pltpu.VMEM((tm, heads), jnp.float32),   # running sum l
                pltpu.VMEM((tm, f_pad), jnp.float32),   # acc
            ],
        ),
        out_shape=jax.ShapeDtypeStruct((n_pad, out_pad), jnp.float32),
        compiler_params=pltpu.CompilerParams(
            dimension_semantics=("parallel", "arbitrary"),
            vmem_limit_bytes=vmem_b),
    )(tile_nnz, adj, xw, asrcT, adst, bias_pad)
    return out  # [N_pad, out_pad]; real data in [:, :out_dim]


# --------------------------------------------------------------------------
# Parameters & full forward (mirrors GAT.forward in eval mode).
# --------------------------------------------------------------------------
def init_params(key, in_dim, hidden_dim, heads1, num_classes):
    ks = jax.random.split(key, 6)

    def glorot(k, shape):
        limit = (6.0 / (shape[0] + shape[1])) ** 0.5
        return jax.random.uniform(k, shape, jnp.float32, -limit, limit)

    layer0_out = heads1 * hidden_dim
    return {
        "w1": glorot(ks[0], (in_dim, heads1 * hidden_dim)),
        "att_src1": glorot(ks[1], (heads1, hidden_dim)),
        "att_dst1": glorot(ks[2], (heads1, hidden_dim)),
        "b1": jnp.zeros((1, heads1 * hidden_dim), jnp.float32),
        "w2": glorot(ks[3], (layer0_out, 1 * num_classes)),
        "att_src2": glorot(ks[4], (1, num_classes)),
        "att_dst2": glorot(ks[5], (1, num_classes)),
        "b2": jnp.zeros((1, num_classes), jnp.float32),
    }


def gat_forward(params, feat, edge_index, mask, labels, *, hidden_dim, heads,
                num_classes, tm=128, tk=512):
    """conv1 -> ELU -> conv2 -> mask -> CE loss / argmax (dropout = identity, eval)."""
    feat = jnp.squeeze(feat).astype(jnp.float32)
    edge_index = jnp.squeeze(edge_index).astype(jnp.int32)
    mask = jnp.squeeze(mask).astype(bool)
    labels = jnp.squeeze(labels).astype(jnp.int32)
    n, in_dim = feat.shape

    node_tile = max(tm, tk)
    assert node_tile % tm == 0 and node_tile % tk == 0
    n_pad = _round_up(n, node_tile)
    in_pad = _round_up(in_dim, 128)

    # Padded rows have zero features and no edges; sliced off before the loss.
    x = jnp.zeros((n_pad, in_pad), jnp.float32).at[:n, :in_dim].set(feat)

    # Dense int8 adjacency adj[dst, src] with self loops (add_self_loops=True).
    adj = jnp.zeros((n_pad, n_pad), jnp.int8)
    adj = adj.at[edge_index[1], edge_index[0]].set(1)
    adj = adj.at[jnp.arange(n), jnp.arange(n)].set(1)

    # Per-(row-tile, col-tile) nonzero counts for the scalar-prefetch tile skip.
    rt, ct = n_pad // tm, n_pad // tk
    tile_nnz = adj.astype(jnp.int32).reshape(rt, tm, ct, tk).sum(axis=(1, 3))
    tile_nnz = tile_nnz.reshape(-1)            # flattened, index = i * ct + j

    h1 = gat_conv(x, params["w1"], params["att_src1"], params["att_dst1"],
                  params["b1"], adj, tile_nnz, heads=heads[0], f_out=hidden_dim,
                  concat=True, apply_elu=True, tm=tm, tk=tk)
    h2 = gat_conv(h1, params["w2"], params["att_src2"], params["att_dst2"],
                  params["b2"], adj, tile_nnz, heads=heads[1], f_out=num_classes,
                  concat=False, apply_elu=False, tm=tm, tk=tk)
    scores = h2[:n, :num_classes]

    # Glue: boolean masking / cross-entropy / argmax on concrete arrays.
    s = scores[mask]
    y = labels[mask]
    logp = jax.nn.log_softmax(s, axis=1)
    loss = -jnp.mean(logp[jnp.arange(y.shape[0]), y])
    pred = jnp.argmax(s, axis=1)
    return loss, pred, y


if __name__ == "__main__":
    N, IN_DIM, HIDDEN, HEADS, NUM_CLASSES, N_EDGES = 200, 48, 8, [8, 1], 4, 800
    TM, TK = 128, 128   # small tiles so the smoke test exercises the multi-tile
                        # online-softmax path and the tile-skip path

    key = jax.random.PRNGKey(0)
    k_feat, k_src, k_dst, k_mask, k_label, k_param = jax.random.split(key, 6)

    feat = jax.random.normal(k_feat, (N, IN_DIM), jnp.float32)
    src = jax.random.randint(k_src, (N_EDGES,), 0, N, jnp.int32)
    dst = jax.random.randint(k_dst, (N_EDGES,), 0, N, jnp.int32)
    edge_index = jnp.stack([src, dst], axis=0)          # [2, E]: row0=src, row1=dst
    mask = jax.random.bernoulli(k_mask, 0.5, (N,)).at[0].set(True)
    labels = jax.random.randint(k_label, (N,), 0, NUM_CLASSES, jnp.int32)
    nodes = jnp.arange(N, dtype=jnp.int32)              # unused (matches module signature)

    params = init_params(k_param, IN_DIM, HIDDEN, HEADS[0], NUM_CLASSES)

    loss, pred, y = gat_forward(params, feat, edge_index, mask, labels,
                                hidden_dim=HIDDEN, heads=HEADS,
                                num_classes=NUM_CLASSES, tm=TM, tk=TK)
    jax.block_until_ready((loss, pred, y))
    print("KERNEL_OK")
</pallas_src>

<mosaic_0001>
module attributes {stable_mosaic.version = 11 : i64} {
  func.func @_gat_linear_kernel(%arg0: i32, %arg1: memref<128x128xf32, #tpu.memory_space<vmem>>, %arg2: memref<128x128xbf16, #tpu.memory_space<vmem>>, %arg3: memref<8x128xf32, #tpu.memory_space<vmem>>, %arg4: memref<128x8xf32, #tpu.memory_space<vmem>>, %arg5: memref<128x128xbf16, #tpu.memory_space<vmem>>, %arg6: memref<8x128xf32, #tpu.memory_space<vmem>>, %arg7: memref<128x8xf32, #tpu.memory_space<vmem>>) attributes {dimension_semantics = [#tpu.dimension_semantics<parallel>], iteration_bounds = array<i64: 2>, scalar_prefetch = 0 : i64, scratch_operands = 0 : i64, tpu.core_type = #tpu.core_type<tc>, window_params = [{transform_indices = @transform_0, window_bounds = array<i64: 128, 128>}, {pipeline_mode = #tpu.pipeline_mode<synchronous>, transform_indices = @transform_1, window_bounds = array<i64: 128, 128>}, {pipeline_mode = #tpu.pipeline_mode<synchronous>, transform_indices = @transform_2, window_bounds = array<i64: 8, 128>}, {pipeline_mode = #tpu.pipeline_mode<synchronous>, transform_indices = @transform_3, window_bounds = array<i64: 128, 8>}, {transform_indices = @transform_4, window_bounds = array<i64: 128, 128>}, {transform_indices = @transform_5, window_bounds = array<i64: 8, 128>}, {transform_indices = @transform_6, window_bounds = array<i64: 128, 8>}]} {
    %c0 = arith.constant 0 : index
    %c0_0 = arith.constant 0 : index
    %0 = vector.load %arg1[%c0, %c0_0] : memref<128x128xf32, #tpu.memory_space<vmem>>, vector<128x128xf32>
    %1 = arith.truncf %0 : vector<128x128xf32> to vector<128x128xbf16>
    %c0_1 = arith.constant 0 : index
    %c0_2 = arith.constant 0 : index
    %2 = vector.load %arg2[%c0_1, %c0_2] : memref<128x128xbf16, #tpu.memory_space<vmem>>, vector<128x128xbf16>
    %cst = arith.constant dense<0.000000e+00> : vector<128x128xf32>
    %3 = tpu.matmul %1, %2, %cst {dimension_numbers = #tpu.dot_dimension_numbers<[1], [0], [0], [1], [0, 0, 1, 1], [], []>} : vector<128x128xbf16>, vector<128x128xbf16>, vector<128x128xf32> -> vector<128x128xf32>
    %4 = arith.truncf %3 : vector<128x128xf32> to vector<128x128xbf16>
    %c0_3 = arith.constant 0 : index
    %c0_4 = arith.constant 0 : index
    %5 = vector.load %arg5[%c0_3, %c0_4] : memref<128x128xbf16, #tpu.memory_space<vmem>>, vector<128x128xbf16>
    tpu.vector_store %arg5[%c0_3, %c0_4], %4 {strides = array<i32>} : memref<128x128xbf16, #tpu.memory_space<vmem>>, vector<128x128xbf16>,
    %c0_5 = arith.constant 0 : index
    %c0_6 = arith.constant 0 : index
    %6 = vector.load %arg3[%c0_5, %c0_6] : memref<8x128xf32, #tpu.memory_space<vmem>>, vector<8x128xf32>
    %cst_7 = arith.constant dense<0.000000e+00> : vector<8x128xf32>
    %7 = tpu.matmul %6, %3, %cst_7 {dimension_numbers = #tpu.dot_dimension_numbers<[1], [1], [0], [0], [0, 0, 1, 0], [], []>} : vector<8x128xf32>, vector<128x128xf32>, vector<8x128xf32> -> vector<8x128xf32>
    %c0_8 = arith.constant 0 : index
    %c0_9 = arith.constant 0 : index
    %8 = vector.load %arg6[%c0_8, %c0_9] : memref<8x128xf32, #tpu.memory_space<vmem>>, vector<8x128xf32>
    tpu.vector_store %arg6[%c0_8, %c0_9], %7 {strides = array<i32>} : memref<8x128xf32, #tpu.memory_space<vmem>>, vector<8x128xf32>,
    %c0_10 = arith.constant 0 : index
    %c0_11 = arith.constant 0 : index
    %9 = vector.load %arg4[%c0_10, %c0_11] : memref<128x8xf32, #tpu.memory_space<vmem>>, vector<128x8xf32>
    %cst_12 = arith.constant dense<0.000000e+00> : vector<128x8xf32>
    %10 = tpu.matmul %3, %9, %cst_12 {dimension_numbers = #tpu.dot_dimension_numbers<[1], [0], [0], [1], [0, 0, 1, 1], [], []>} : vector<128x128xf32>, vector<128x8xf32>, vector<128x8xf32> -> vector<128x8xf32>
    %c0_13 = arith.constant 0 : index
    %c0_14 = arith.constant 0 : index
    %11 = vector.load %arg7[%c0_13, %c0_14] : memref<128x8xf32, #tpu.memory_space<vmem>>, vector<128x8xf32>
    tpu.vector_store %arg7[%c0_13, %c0_14], %10 {strides = array<i32>} : memref<128x8xf32, #tpu.memory_space<vmem>>, vector<128x8xf32>,
    return
  }
  func.func @transform_0(%arg0: i32) -> (i32, i32) {
    %c0_i32 = arith.constant 0 : i32
    %c0_i32_0 = arith.constant 0 : i32
    return %arg0, %c0_i32 : i32, i32
  }
  func.func @transform_1(%arg0: i32) -> (i32, i32) {
    %c0_i32 = arith.constant 0 : i32
    %c0_i32_0 = arith.constant 0 : i32
    %c0_i32_1 = arith.constant 0 : i32
    return %c0_i32, %c0_i32_0 : i32, i32
  }
  func.func @transform_2(%arg0: i32) -> (i32, i32) {
    %c0_i32 = arith.constant 0 : i32
    %c0_i32_0 = arith.constant 0 : i32
    %c0_i32_1 = arith.constant 0 : i32
    return %c0_i32, %c0_i32_0 : i32, i32
  }
  func.func @transform_3(%arg0: i32) -> (i32, i32) {
    %c0_i32 = arith.constant 0 : i32
    %c0_i32_0 = arith.constant 0 : i32
    %c0_i32_1 = arith.constant 0 : i32
    return %c0_i32, %c0_i32_0 : i32, i32
  }
  func.func @transform_4(%arg0: i32) -> (i32, i32) {
    %c0_i32 = arith.constant 0 : i32
    %c0_i32_0 = arith.constant 0 : i32
    return %arg0, %c0_i32 : i32, i32
  }
  func.func @transform_5(%arg0: i32) -> (i32, i32) {
    %c0_i32 = arith.constant 0 : i32
    %c0_i32_0 = arith.constant 0 : i32
    return %c0_i32, %arg0 : i32, i32
  }
  func.func @transform_6(%arg0: i32) -> (i32, i32) {
    %c0_i32 = arith.constant 0 : i32
    %c0_i32_0 = arith.constant 0 : i32
    return %arg0, %c0_i32 : i32, i32
  }
}

</mosaic_0001>

<bundles_post_ra>
// kernel: tpu_custom_call.1
= control target key start
LH: loop header
LB: loop body
LE: loop exit
PB: predicated region body
PF: predicated region fallthrough
CT: control target
= control target key end

     0   :  { %12 = vsyncpa [#allocation3], 0  ;;  %s1920_s0 = inlined_call_operand.hbm [shape: f32[256,128], index: 0, kind: input, shape index: {}]   ;;  %s1921_s1 = inlined_call_operand.vmem [shape: bf16[128,128], index: 1, kind: input, shape index: {}]   ;;  %s1922_s2 = inlined_call_operand.vmem [shape: f32[8,128], index: 2, kind: input, shape index: {}]   ;;  %s1923_s3 = inlined_call_operand.vmem [shape: f32[128,8], index: 3, kind: input, shape index: {}]   ;;  %s1924_s4 = inlined_call_operand.hbm [shape: bf16[256,128], index: 4, kind: output, shape index: {0}]   ;;  %s1925_s5 = inlined_call_operand.hbm [shape: f32[8,256], index: 5, kind: output, shape index: {1}]   ;;  %s1926_s6 = inlined_call_operand.vmem [shape: f32[256,8], index: 6, kind: output, shape index: {2}]  }
   0x1   :  { %14 = vsyncpa [#allocation3 + $0x1], 0 }
   0x2   :  { %15 = vsyncpa [#allocation4], 0 }
   0x3   :  { %17 = vsyncpa [#allocation4 + $0x1], 0 }
   0x4   :  { %18 = vsyncpa [#allocation7], 0 }
   0x5   :  { %20 = vsyncpa [#allocation7 + $0x1], 0  ;;  %s1576_s21 = smov 0   ;;  %s1578_s22 = smov 0  }
   0x6   :  { %s1580_s23 = smov 0   ;;  %s1582_s24 = smov 0  }
   0x7 LB: > { %s1597_s25 = sadd.s32 4294967295, %s1529_s24   ;;  %s983_s26 = sadd.s32 4294967294, %s1529_s24   ;;  %s1529_s24 = sphi %s1582_s24, %s1939_s24   ;;  %s1525_s23 = sphi %s1580_s23, %s1938_s23   ;;  %s1521_s22 = sphi %s1578_s22, %s1937_s22   ;;  %s1517_s21 = sphi %s1576_s21, %s1936_s21  }
   0x8   : > { %s1601_s27 = sadd.s32 1, %s1529_s24   ;;  %s33_s28 = sadd.s32 1, %s1525_s23 }
   0x9   : > { %s30_s29 = ssub.s32 %s1529_s24, %s1601_s27  ;;  %p40_p0 = scmp.ne.s32.totalorder %s1525_s23, %s1521_s22 }
   0xa   : > { %p31_p1 = scmp.eq.s32.totalorder %s30_s29, 0  ;;  %p41_p2 = scmp.eq.s32.totalorder %s1529_s24, 0 }
   0xb   : > { %p46_p3 = scmp.ne.s32.totalorder %s1521_s22, %s1517_s21  ;;  %p47_p4 = scmp.eq.s32.totalorder %s1597_s25, 0 }
   0xc   : > { %s1613_s30 = scalar_select %p31_p1, %s1525_s23, %s33_s28  }
   0xd   : > { %p1615_p5 = por %p41_p2, %p40_p0  ;;  %p1619_p6 = por %p47_p4, %p46_p3 }
   0xe   : > { %p133_p7 = scmp.eq.s32.totalorder %s1597_s25, 1  ;;  %p139_p8 = scmp.eq.s32.totalorder %s983_s26, 1 }
   0xf   : > { %p1352_p10 = scmp.lt.s32.totalorder %s1529_s24, 2  ;;  %s220_s11 = sand.u32 1, %s1525_s23  }
  0x10   : > { %p1626_p11 = por %p133_p7, %p40_p0  ;;  %p1630_p12 = por %p139_p8, %p46_p3 }
  0x11   : > { %s1026_s12 = sshll.u32 %s1529_s24, 11  ;;  %s986_s13 = sshll.u32 %s220_s11, 7 }
  0x12   : > { %s1930_s9 = scalar_select %p1626_p11, 1, 0 }
  0x13   : > { %s1931_s10 = scalar_select %p1630_p12, 1, 0 }
  0x14   : > { %s1639_s16 = scalar_lea.hbm %s1920_s0, %s1026_s12  ;;  %s224_s17 = scalar_lea.vmem [#allocation2], %s986_s13 }
  0x15   : > { %s231_s18 = sshll.u32 %s224_s17, 4  ;;  %p1643_p13 = pnand %p1352_p10, %p1615_p5  ;;  %s1647_s18 = int_to_ptr.vmem [resolvable:$true] %s231_s18 }
  0x16   : > { %s1649_s20 = scalar_lea.sflag [#allocation3], %s220_s11  ;;  %s1401_s26 = scalar_lea.hbm %s1639_s16, 2048 }
  0x17   : > { %p1402_p0 = scmp.ne.s32.totalorder %s1639_s16, %s1401_s26  ;;  %p1403_p1 = pneg %p1643_p13 }
  0x18   : > { %s1406_s7 = scalar_lea.hbm %s1920_s0, 4096  ;;  %p1407_p4 = scmp.lt.u32.totalorder %s1639_s16, %s1920_s0 }
  0x19   : > { %p1404_p2 = pnand %p1403_p1, %p1402_p0  ;;  %p1408_p5 = scmp.lt.u32.totalorder %s1406_s7, %s1401_s26 }
  0x1a   : > { %p1410_p8 = scmp.lt.u32.totalorder %s1401_s26, %s1639_s16 }
  0x1b   : > { %p1405_p3 = pneg %p1404_p2  ;;  %p1409_p7 = por %p1408_p5, %p1407_p4 }
  0x1d   : > { %p1411_p10 = por %p1410_p8, %p1409_p7 }
  0x1f   : > { %p1412_p9 = pnand %p1411_p10, %p1405_p3 }
  0x21   : > { %1415 = shalt.err (!%p1412_p9)
}
  0x22   : > { %s1416_s11 = scalar_lea.vmem %s1647_s18, 2048  ;;  %s1531_s14 = smov [#allocation2]  }
  0x23   : > { %p1417_p0 = scmp.ne.s32.totalorder %s1647_s18, %s1416_s11  ;;  %s1421_s15 = sshll.u32 %s1531_s14, 4  ;;  %s1422_s15 = int_to_ptr.vmem [resolvable:$false] %s1421_s15 }
  0x24   : > { %s1423_s17 = scalar_lea.vmem %s1422_s15, 4096  ;;  %p1424_p11 = scmp.lt.s32.totalorder %s1647_s18, %s1422_s15 }
  0x25   : > { %p1419_p2 = pnand %p1417_p0, %p1403_p1  ;;  %p1425_p4 = scmp.lt.s32.totalorder %s1423_s17, %s1416_s11 }
  0x27   : > { %p1420_p12 = pneg %p1419_p2  ;;  %p1426_p5 = por %p1425_p4, %p1424_p11 }
  0x29   : > { %p1427_p7 = pnand %p1426_p5, %p1420_p12 }
  0x2b   : > { %1430 = shalt.err (!%p1427_p7)
}
  0x2c   : > { %s1532_s26 = smov 128   ;;  %s1533_s28 = smov 8  }
  0x2d   : > { %1344 = dma.hbm_to_vmem [thread:$0]  (!%p1643_p13), %s1639_s16, 2048, %s1647_s18, %s1649_s20, %s1532_s26, %s1532_s26, %s1533_s28  }
  0x2e   : > { %p989_p9 = scmp.ge.s32.totalorder %s1529_s24, 1  ;;  %p239_p1 = scmp.lt.s32.totalorder %s1529_s24, 3 }
  0x30   : > { %p240_p3 = pnand %p989_p9, %p239_p1 }
  0x31   : > { %s1680_s29 = sand.u32 (!%p240_p3), 1, %s1521_s22  }
  0x32   : > { %243 = sbr.rel (%p240_p3) target bundleno = 597 (0x255), region = 36  ;;  %s990_s7 = sshll.u32 (!%p240_p3), %s1680_s29, 7 }
  0x33   : > { %s246_s12 = scalar_lea.sflag (!%p240_p3), [#allocation3], %s1680_s29  ;;  %s1684_s13 = scalar_lea.vmem (!%p240_p3), [#allocation2], %s990_s7 }
  0x39   : > { %1504 = dma.done.wait (%p1619_p6), %s246_s12, 2048  }
  0x3a   : > { %1506 = vsyncadd (%p1619_p6), %s246_s12, 4294965248  ;;  %v1393_v0 = vld [vmem:[%s1921_s1] sm:$0xff]   ;;  %v1394_v1 = vld [vmem:[%s1921_s1 + $0x8] sm:$0xff]   ;;  %v1534_v56 = vmov 0.0|0.0   ;;  %vm1535_vm0 = vmmov 0   ;;  %v1536_v57 = vmov 0.0  }
  0x3b   : > { %1156 = vmatprep.subr.bf16.mxu0 %v1393_v0  ;;  %v1395_v2 = vld [vmem:[%s1921_s1 + $0x10] sm:$0xff]   ;;  %v1396_v3 = vld [vmem:[%s1921_s1 + $0x18] sm:$0xff]   ;;  %v297_v4 = vld [vmem:[%s1684_s13] sm:$0xff]  ;;  %1279 = vmatprep.subr.bf16.mxu1 %v1534_v56  ;;  %s1043_s16 = sshll.u32 %s1597_s25, 10  ;;  %s813_s11 = scalar_lea.sflag [#allocation4], %s1680_s29 }
  0x3c   : > { %1157 = vmatpush3.bf16.msra.mxu0 %v1393_v0  ;;  %v298_v5 = vld [vmem:[%s1684_s13 + $0x8] sm:$0xff]  ;;  %v1397_v7 = vld [vmem:[%s1921_s1 + $0x20] sm:$0xff]   ;;  %v1399_v9 = vld [vmem:[%s1921_s1 + $0x30] sm:$0xff]   ;;  %1220 = vmatprep.mubr.msk.f32.mxu1 %vm1535_vm0, %v1536_v57  ;;  %s1807_s20 = scalar_lea.hbm %s1924_s4, %s1043_s16  ;;  %p1933_p11 = scmp.ne.s32.totalorder %s1930_s9, 0 }
  0x3d   : > { %1158 = vmatprep.subr.bf16.mxu0 %v1394_v1  ;;  %v313_v6 = vpack.c.bf16 %v298_v5, %v297_v4  ;;  %v1398_v8 = vld [vmem:[%s1921_s1 + $0x28] sm:$0xff]   ;;  %v1400_v10 = vld [vmem:[%s1921_s1 + $0x38] sm:$0xff]   ;;  %v634_v11 = vld [vmem:[%s1923_s3] sm:$0xff]  ;;  %s1537_s8 = smov [#allocation5]  }
  0x3e   : > { %v635_v12 = vld [vmem:[%s1923_s3 + $0x8] sm:$0xff]  ;;  %v299_v13 = vld [vmem:[%s1684_s13 + $0x10] sm:$0xff]  ;;  %v300_v14 = vld [vmem:[%s1684_s13 + $0x18] sm:$0xff]  ;;  %s1435_s15 = sshll.u32 %s1537_s8, 4  ;;  %s1436_s15 = int_to_ptr.vmem [resolvable:$false] %s1435_s15 }
  0x3f   : > { %1172 = vmatprep.mubr.bf16.mxu0 %v313_v6  ;;  %v301_v15 = vld [vmem:[%s1684_s13 + $0x20] sm:$0xff]  ;;  %v302_v16 = vld [vmem:[%s1684_s13 + $0x28] sm:$0xff]  ;;  %v1303_v17 = vpack.c.bf16 %v635_v12, %v634_v11  ;;  %v636_v18 = vld [vmem:[%s1923_s3 + $0x10] sm:$0xff]  ;;  %v314_v20 = vpack.c.bf16 %v300_v14, %v299_v13  ;;  %s1437_s17 = scalar_lea.vmem %s1436_s15, 2048 }
  0x40   : > { %1159 = vmatpush3.bf16.msra.mxu0 %v1394_v1  ;;  %v637_v19 = vld [vmem:[%s1923_s3 + $0x18] sm:$0xff]  ;;  %v315_v21 = vpack.c.bf16 %v302_v16, %v301_v15  ;;  %v638_v23 = vld [vmem:[%s1923_s3 + $0x20] sm:$0xff]  ;;  %v639_v24 = vld [vmem:[%s1923_s3 + $0x28] sm:$0xff] }
  0x41   : > { %1160 = vmatprep.subr.bf16.mxu0 %v1395_v2  ;;  %v1307_v22 = vpack.c.bf16 %v637_v19, %v636_v18  ;;  %v303_v25 = vld [vmem:[%s1684_s13 + $0x30] sm:$0xff]  ;;  %v304_v26 = vld [vmem:[%s1684_s13 + $0x38] sm:$0xff]  ;;  %v305_v27 = vld [vmem:[%s1684_s13 + $0x40] sm:$0xff]  ;;  %v1311_v29 = vpack.c.bf16 %v639_v24, %v638_v23 }
  0x42   : > { %v306_v28 = vld [vmem:[%s1684_s13 + $0x48] sm:$0xff]  ;;  %v640_v30 = vld [vmem:[%s1923_s3 + $0x30] sm:$0xff]  ;;  %v641_v31 = vld [vmem:[%s1923_s3 + $0x38] sm:$0xff]  ;;  %v316_v32 = vpack.c.bf16 %v304_v26, %v303_v25 }
  0x43   : > { %v317_v33 = vpack.c.bf16 %v306_v28, %v305_v27  ;;  %v1315_v34 = vpack.c.bf16 %v641_v31, %v640_v30  ;;  %v642_v35 = vld [vmem:[%s1923_s3 + $0x40] sm:$0xff]  ;;  %v643_v36 = vld [vmem:[%s1923_s3 + $0x48] sm:$0xff]  ;;  %v307_v37 = vld [vmem:[%s1684_s13 + $0x50] sm:$0xff] }
  0x44   : > { %1161 = vmatpush3.bf16.msra.mxu0 %v1395_v2  ;;  %v308_v38 = vld [vmem:[%s1684_s13 + $0x58] sm:$0xff]  ;;  %v309_v39 = vld [vmem:[%s1684_s13 + $0x60] sm:$0xff]  ;;  %v310_v40 = vld [vmem:[%s1684_s13 + $0x68] sm:$0xff]  ;;  %v1319_v41 = vpack.c.bf16 %v643_v36, %v642_v35 }
  0x45   : > { %1162 = vmatprep.subr.bf16.mxu0 %v1396_v3  ;;  %v644_v42 = vld [vmem:[%s1923_s3 + $0x50] sm:$0xff]  ;;  %v645_v43 = vld [vmem:[%s1923_s3 + $0x58] sm:$0xff]  ;;  %v318_v44 = vpack.c.bf16 %v308_v38, %v307_v37  ;;  %v319_v45 = vpack.c.bf16 %v310_v40, %v309_v39  ;;  %v646_v47 = vld [vmem:[%s1923_s3 + $0x60] sm:$0xff] }
  0x46   : > { %v1323_v46 = vpack.c.bf16 %v645_v43, %v644_v42  ;;  %v647_v48 = vld [vmem:[%s1923_s3 + $0x68] sm:$0xff]  ;;  %v311_v49 = vld [vmem:[%s1684_s13 + $0x70] sm:$0xff]  ;;  %v312_v50 = vld [vmem:[%s1684_s13 + $0x78] sm:$0xff]  ;;  %s991_s13 = sshll.u32 %s1680_s29, 6 }
  0x47   : > { %v1327_v51 = vpack.c.bf16 %v647_v48, %v646_v47  ;;  %v320_v52 = vpack.c.bf16 %v312_v50, %v311_v49  ;;  %v648_v53 = vld [vmem:[%s1923_s3 + $0x70] sm:$0xff]  ;;  %v649_v54 = vld [vmem:[%s1923_s3 + $0x78] sm:$0xff]  ;;  %s1780_s26 = scalar_lea.vmem [#allocation5], %s991_s13  ;;  %v562_v18 = vld [vmem:[%s1922_s2] sm:$0xff] }
  0x48   : > { %1163 = vmatpush3.bf16.msra.mxu0 %v1396_v3  ;;  %v1331_v55 = vpack.c.bf16 %v649_v54, %v648_v53  ;;  %s836_s12 = sshll.u32 %s1780_s26, 4  ;;  %s1802_s12 = int_to_ptr.vmem [resolvable:$true] %s836_s12 }
  0x49   : > { %1164 = vmatprep.subr.bf16.mxu0 %v1397_v7  ;;  %s1431_s14 = scalar_lea.vmem %s1802_s12, 1024  ;;  %p1438_p8 = scmp.lt.s32.totalorder %s1802_s12, %s1436_s15 }
  0x4a   : > { %p1432_p6 = scmp.ne.s32.totalorder %s1802_s12, %s1431_s14  ;;  %p1439_p10 = scmp.lt.s32.totalorder %s1437_s17, %s1431_s14 }
  0x4c   : > { %1165 = vmatpush3.bf16.msra.mxu0 %v1397_v7  ;;  %p1433_p12 = pnand %p1432_p6, %p1933_p11  ;;  %p1440_p0 = por %p1439_p10, %p1438_p8 }
  0x4d   : > { %1166 = vmatprep.subr.bf16.mxu0 %v1398_v8 }
  0x4e   : > { %p1434_p13 = pneg %p1433_p12 }
  0x50   : > { %1167 = vmatpush3.bf16.msra.mxu0 %v1398_v8  ;;  %p1441_p2 = pnand %p1440_p0, %p1434_p13 }
  0x51   : > { %1168 = vmatprep.subr.bf16.mxu0 %v1399_v9 }
  0x54   : > { %1169 = vmatpush3.bf16.msra.mxu0 %v1399_v9 }
  0x55   : > { %1170 = vmatprep.subr.bf16.mxu0 %v1400_v10 }
  0x58   : > { %1171 = vmatpush3.bf16.msra.mxu0 %v1400_v10 }
  0x59   : > { %1304 = vmatprep.subr.bf16.mxu0 %v1303_v17 }
  0x5b   : > { %1173 = vmatmul.mubr.bf16.vlgmr.msra.gmra.mrb[0].mxu0 %v314_v20 }
  0x5c   : > { %1176 = vmatprep.mubr.bf16.mxu0 %v315_v21  ;;  %1306 = vmatpush3.bf16.msra.mxu0 %v1303_v17 }
  0x5d   : > { %1308 = vmatprep.subr.bf16.mxu0 %v1307_v22 }
  0x60   : > { %1310 = vmatpush3.bf16.msra.mxu0 %v1307_v22 }
  0x61   : > { %1312 = vmatprep.subr.bf16.mxu0 %v1311_v29 }
  0x63   : > { %1177 = vmatmul.mubr.bf16.gmra.mrb[4].mxu0 %v316_v32 }
  0x64   : > { %1180 = vmatprep.mubr.bf16.mxu0 %v317_v33  ;;  %1314 = vmatpush3.bf16.msra.mxu0 %v1311_v29 }
  0x65   : > { %1316 = vmatprep.subr.bf16.mxu0 %v1315_v34 }
  0x68   : > { %1318 = vmatpush3.bf16.msra.mxu0 %v1315_v34 }
  0x69   : > { %1320 = vmatprep.subr.bf16.mxu0 %v1319_v41 }
  0x6b   : > { %1181 = vmatmul.mubr.bf16.gmra.mrb[8].mxu0 %v318_v44 }
  0x6c   : > { %1184 = vmatprep.mubr.bf16.mxu0 %v319_v45  ;;  %1322 = vmatpush3.bf16.msra.mxu0 %v1319_v41 }
  0x6d   : > { %1324 = vmatprep.subr.bf16.mxu0 %v1323_v46 }
  0x70   : > { %1326 = vmatpush3.bf16.msra.mxu0 %v1323_v46 }
  0x71   : > { %1328 = vmatprep.subr.bf16.mxu0 %v1327_v51 }
  0x73   : > { %1185 = vmatmul.mubr.bf16.gmra.mrb[12].mxu0 %v320_v52 }
  0x74   : > { %1330 = vmatpush3.bf16.msra.mxu0 %v1327_v51 }
  0x75   : > { %1332 = vmatprep.subr.bf16.mxu0 %v1331_v55 }
  0x78   : > { %1334 = vmatpush3.bf16.msra.mxu0 %v1331_v55 }
 0x12e   : > { %v1174_v58 = vpop.f32.mrb[0].mxu0 }
 0x12f   : > { %v419_v59 = vpop.f32.mrb[1].mxu0 }
 0x130   : > { %v1175_v60 = vpop.f32.mrb[2].mxu0  ;;  %1255 = vmatprep.mubr.f32.mxu0 %v419_v59 }
 0x131   : > { %v1052_v61 = vpack.c.bf16 %v1175_v60, %v1174_v58  ;;  %v422_v62 = vpop.f32.mrb[3].mxu0 }
 0x132   : > { %1256 = vmatmul.mubr.f32.vlgmr.msra.gmra.mrb[16].mxu0 %v422_v62  ;;  %v1047_v63 = vpack.c.bf16 %v422_v62, %v419_v59 }
 0x133   : > { %1084 = vst [vmem:[%s1780_s26 + $0x8] sm:$0xff] %v1052_v61   ;;  %1258 = vmatprep.mubr.f32.mxu0 %v1174_v58 }
 0x134   : > { %1048 = vst [vmem:[%s1780_s26] sm:$0xff] %v1047_v63   ;;  %1281 = vmatpush3.bf16.xpose.msra.mxu1 %v1047_v63 }
 0x135   : > { %1282 = vmatprep.subr.bf16.mxu1 %v1534_v56 }
 0x136   : > { %v1178_v0 = vpop.f32.mrb[4].mxu0  ;;  %1259 = vmatmul.mubr.f32.gmra.mrb[18].mxu0 %v1175_v60 }
 0x137   : > { %v435_v1 = vpop.f32.mrb[5].mxu0 }
 0x138   : > { %v1179_v2 = vpop.f32.mrb[6].mxu0  ;;  %1261 = vmatprep.mubr.f32.mxu0 %v435_v1 }
 0x139   : > { %v1062_v3 = vpack.c.bf16 %v1179_v2, %v1178_v0  ;;  %v438_v4 = vpop.f32.mrb[7].mxu0 }
 0x13a   : > { %v1057_v5 = vpack.c.bf16 %v438_v4, %v435_v1  ;;  %1262 = vmatmul.mubr.f32.gmra.mrb[20].mxu0 %v438_v4 }
 0x13b   : > { %1086 = vst [vmem:[%s1780_s26 + $0x18] sm:$0xff] %v1062_v3   ;;  %1264 = vmatprep.mubr.f32.mxu0 %v1178_v0 }
 0x13c   : > { %1085 = vst [vmem:[%s1780_s26 + $0x10] sm:$0xff] %v1057_v5   ;;  %1284 = vmatpush3.bf16.xpose.msra.mxu1 %v1052_v61 }
 0x13d   : > { %1285 = vmatprep.subr.bf16.mxu1 %v1534_v56 }
 0x13e   : > { %1265 = vmatmul.mubr.f32.gmra.mrb[22].mxu0 %v1179_v2  ;;  %v1182_v6 = vpop.f32.mrb[8].mxu0 }
 0x13f   : > { %v451_v7 = vpop.f32.mrb[9].mxu0 }
 0x140   : > { %v1183_v8 = vpop.f32.mrb[10].mxu0  ;;  %1267 = vmatprep.mubr.f32.mxu0 %v451_v7 }
 0x141   : > { %v1072_v9 = vpack.c.bf16 %v1183_v8, %v1182_v6  ;;  %v454_v10 = vpop.f32.mrb[11].mxu0 }
 0x142   : > { %v1067_v11 = vpack.c.bf16 %v454_v10, %v451_v7  ;;  %1268 = vmatmul.mubr.f32.gmra.mrb[24].mxu0 %v454_v10 }
 0x143   : > { %1088 = vst [vmem:[%s1780_s26 + $0x28] sm:$0xff] %v1072_v9   ;;  %1270 = vmatprep.mubr.f32.mxu0 %v1182_v6 }
 0x144   : > { %1287 = vmatpush3.bf16.xpose.msra.mxu1 %v1057_v5  ;;  %1087 = vst [vmem:[%s1780_s26 + $0x20] sm:$0xff] %v1067_v11  }
 0x145   : > { %1288 = vmatprep.subr.bf16.mxu1 %v1534_v56 }
 0x146   : > { %1271 = vmatmul.mubr.f32.gmra.mrb[26].mxu0 %v1183_v8  ;;  %v1186_v12 = vpop.f32.mrb[12].mxu0 }
 0x147   : > { %v467_v13 = vpop.f32.mrb[13].mxu0 }
 0x148   : > { %v1187_v14 = vpop.f32.mrb[14].mxu0  ;;  %1273 = vmatprep.mubr.f32.mxu0 %v467_v13 }
 0x149   : > { %v1082_v15 = vpack.c.bf16 %v1187_v14, %v1186_v12  ;;  %v470_v16 = vpop.f32.mrb[15].mxu0 }
 0x14a   : > { %v1077_v17 = vpack.c.bf16 %v470_v16, %v467_v13  ;;  %1274 = vmatmul.mubr.f32.gmra.mrb[28].mxu0 %v470_v16 }
 0x14b   : > { %1090 = vst [vmem:[%s1780_s26 + $0x38] sm:$0xff] %v1082_v15   ;;  %1276 = vmatprep.mubr.f32.mxu0 %v1186_v12 }
 0x14c   : > { %1290 = vmatpush3.bf16.xpose.msra.mxu1 %v1062_v3  ;;  %1089 = vst [vmem:[%s1780_s26 + $0x30] sm:$0xff] %v1077_v17  }
 0x14d   : > { %1291 = vmatprep.subr.bf16.mxu1 %v1534_v56 }
 0x14e   : > { %1277 = vmatmul.mubr.f32.gmra.mrb[30].mxu0 %v1187_v14 }
 0x154   : > { %1293 = vmatpush3.bf16.xpose.msra.mxu1 %v1067_v11 }
 0x155   : > { %1294 = vmatprep.subr.bf16.mxu1 %v1534_v56 }
 0x15c   : > { %1296 = vmatpush3.bf16.xpose.msra.mxu1 %v1072_v9 }
 0x15d   : > { %1297 = vmatprep.subr.bf16.mxu1 %v1534_v56 }
 0x164   : > { %1299 = vmatpush3.bf16.xpose.msra.mxu1 %v1077_v17 }
 0x165   : > { %1300 = vmatprep.subr.bf16.mxu1 %v1534_v56 }
 0x16c   : > { %1302 = vmatpush3.bf16.xpose.msra.mxu1 %v1082_v15 }
 0x173   : > { %1221 = vmatmul.mubr.f32.vlgmr.msra.gmra.mrb[0].mxu1 %v562_v18 }
 0x174   : > { %1444 = shalt.err (!%p1441_p2)
}
 0x175   : > { %s1445_s13 = scalar_lea.hbm %s1807_s20, 1024  ;;  %s1449_s7 = scalar_lea.hbm %s1924_s4, 2048 }
 0x176   : > { %p1446_p4 = scmp.ne.s32.totalorder %s1807_s20, %s1445_s13  ;;  %p1450_p9 = scmp.lt.u32.totalorder %s1807_s20, %s1924_s4 }
 0x177   : > { %p1451_p1 = scmp.lt.u32.totalorder %s1449_s7, %s1445_s13  ;;  %p1453_p6 = scmp.lt.u32.totalorder %s1445_s13, %s1807_s20 }
 0x178   : > { %p1447_p5 = pnand %p1446_p4, %p1933_p11 }
 0x179   : > { %p1452_p3 = por %p1451_p1, %p1450_p9 }
 0x17a   : > { %p1448_p7 = pneg %p1447_p5 }
 0x17b   : > { %p1454_p12 = por %p1453_p6, %p1452_p3 }
 0x17d   : > { %p1455_p13 = pnand %p1454_p12, %p1448_p7 }
 0x17f   : > { %1458 = shalt.err (!%p1455_p13)
}
 0x180   : > { %s1538_s19 = smov 64   ;;  %s1539_s14 = smov 4   ;;  %vm795_vm1 = vcmask 64512  }
 0x181   : > { %1337 = dma.vmem_to_hbm [thread:$0]  (%p1933_p11), %s1802_s12, 1024, %s1807_s20, %s813_s11, %s1538_s19, %s1538_s19, %s1539_s14  }
 0x182   : > { %s993_s8 = sshll.u32 %s1597_s25, 4  ;;  %s992_s12 = sshll.u32 %s1680_s29, 3 }
 0x183   : > { %p291_p8 = scmp.lt.s32.totalorder %s993_s8, 31  ;;  %s280_s20 = scalar_lea.vmem [#allocation6], %s992_s12 }
 0x184   : > { %s852_s11 = sshll.u32 %s280_s20, 4  ;;  %s1023_s28 = sshll.u32 %s1597_s25, 7  ;;  %s1873_s11 = int_to_ptr.vmem [resolvable:$true] %s852_s11 }
 0x185   : > { %s1941_s8 = smov (!%p291_p8, %s993_s8), 31  ;;  %s1878_s18 = scalar_lea.hbm %s1925_s5, %s1023_s28 }
 0x186   : > { %s994_s15 = sshll.u32 %s1941_s8, 3  ;;  %s818_s19 = scalar_lea.sflag [#allocation7], %s1680_s29 }
 0x187   : > { %s1837_s13 = scalar_lea.vmem %s1926_s6, %s994_s15  ;;  %s1459_s14 = scalar_lea.vmem %s1873_s11, 128 }
 0x188   : > { %p1460_p10 = scmp.ne.s32.totalorder %s1873_s11, %s1459_s14  ;;  %s1540_s25 = smov [#allocation6]  }
 0x189   : > { %s1463_s8 = sshll.u32 %s1540_s25, 4  ;;  %s1464_s8 = int_to_ptr.vmem [resolvable:$false] %s1463_s8 }
 0x18a   : > { %p1461_p0 = pnand %p1460_p10, %p1933_p11  ;;  %s1465_s15 = scalar_lea.vmem %s1464_s8, 256 }
 0x18b   : > { %p1466_p4 = scmp.lt.s32.totalorder %s1873_s11, %s1464_s8  ;;  %p1467_p5 = scmp.lt.s32.totalorder %s1465_s15, %s1459_s14 }
 0x18c   : > { %p1462_p2 = pneg %p1461_p0 }
 0x18d   : > { %p1468_p7 = por %p1467_p5, %p1466_p4 }
 0x18f   : > { %p1469_p9 = pnand %p1468_p7, %p1462_p2 }
 0x205   : > { %v1257_v19 = vpop.f32.mrb[16].mxu0 }
 0x206   : > { %797 = vst.msk [vmem:[%s1837_s13 + $0x8] sm:$0xff] %vm795_vm1, %v1257_v19  ;;  %v716_v20 = vpop.f32.mrb[17].mxu0 }
 0x207   : > { %796 = vst.msk [vmem:[%s1837_s13] sm:$0xff] %vm795_vm1, %v716_v20 }
 0x209   : > { %v1260_v21 = vpop.f32.mrb[18].mxu0 }
 0x20a   : > { %799 = vst.msk [vmem:[%s1837_s13 + $0x18] sm:$0xff] %vm795_vm1, %v1260_v21  ;;  %v726_v22 = vpop.f32.mrb[19].mxu0 }
 0x20b   : > { %798 = vst.msk [vmem:[%s1837_s13 + $0x10] sm:$0xff] %vm795_vm1, %v726_v22 }
 0x20d   : > { %v1263_v23 = vpop.f32.mrb[20].mxu0 }
 0x20e   : > { %801 = vst.msk [vmem:[%s1837_s13 + $0x28] sm:$0xff] %vm795_vm1, %v1263_v23  ;;  %v736_v24 = vpop.f32.mrb[21].mxu0 }
 0x20f   : > { %800 = vst.msk [vmem:[%s1837_s13 + $0x20] sm:$0xff] %vm795_vm1, %v736_v24 }
 0x211   : > { %v1266_v25 = vpop.f32.mrb[22].mxu0 }
 0x212   : > { %803 = vst.msk [vmem:[%s1837_s13 + $0x38] sm:$0xff] %vm795_vm1, %v1266_v25  ;;  %v746_v26 = vpop.f32.mrb[23].mxu0 }
 0x213   : > { %802 = vst.msk [vmem:[%s1837_s13 + $0x30] sm:$0xff] %vm795_vm1, %v746_v26 }
 0x215   : > { %v1269_v27 = vpop.f32.mrb[24].mxu0 }
 0x216   : > { %805 = vst.msk [vmem:[%s1837_s13 + $0x48] sm:$0xff] %vm795_vm1, %v1269_v27  ;;  %v756_v28 = vpop.f32.mrb[25].mxu0 }
 0x217   : > { %804 = vst.msk [vmem:[%s1837_s13 + $0x40] sm:$0xff] %vm795_vm1, %v756_v28 }
 0x219   : > { %v1272_v29 = vpop.f32.mrb[26].mxu0 }
 0x21a   : > { %807 = vst.msk [vmem:[%s1837_s13 + $0x58] sm:$0xff] %vm795_vm1, %v1272_v29  ;;  %v766_v30 = vpop.f32.mrb[27].mxu0 }
 0x21b   : > { %806 = vst.msk [vmem:[%s1837_s13 + $0x50] sm:$0xff] %vm795_vm1, %v766_v30 }
 0x21d   : > { %v1275_v31 = vpop.f32.mrb[28].mxu0 }
 0x21e   : > { %809 = vst.msk [vmem:[%s1837_s13 + $0x68] sm:$0xff] %vm795_vm1, %v1275_v31  ;;  %v776_v32 = vpop.f32.mrb[29].mxu0 }
 0x21f   : > { %808 = vst.msk [vmem:[%s1837_s13 + $0x60] sm:$0xff] %vm795_vm1, %v776_v32 }
 0x221   : > { %v1278_v33 = vpop.f32.mrb[30].mxu0 }
 0x222   : > { %811 = vst.msk [vmem:[%s1837_s13 + $0x78] sm:$0xff] %vm795_vm1, %v1278_v33  ;;  %v786_v34 = vpop.f32.mrb[31].mxu0 }
 0x223   : > { %810 = vst.msk [vmem:[%s1837_s13 + $0x70] sm:$0xff] %vm795_vm1, %v786_v34 }
 0x246   : > { %v629_v35 = vpop.f32.mrb[0].mxu1 }
 0x247   : > { %633 = vst [vmem:[%s280_s20] sm:$0xff] %v629_v35  ;;  %v1222_v36 = vpop.f32.mrb[1].mxu1 }
 0x248   : > { %1472 = shalt.err (!%p1469_p9)
}
 0x249   : > { %s1473_s29 = scalar_lea.hbm %s1878_s18, 128  ;;  %s1477_s13 = scalar_lea.hbm %s1925_s5, 256 }
 0x24a   : > { %p1474_p1 = scmp.ne.s32.totalorder %s1878_s18, %s1473_s29  ;;  %p1478_p12 = scmp.lt.u32.totalorder %s1878_s18, %s1925_s5 }
 0x24b   : > { %p1479_p13 = scmp.lt.u32.totalorder %s1477_s13, %s1473_s29  ;;  %p1481_p10 = scmp.lt.u32.totalorder %s1473_s29, %s1878_s18 }
 0x24c   : > { %p1475_p3 = pnand %p1474_p1, %p1933_p11 }
 0x24d   : > { %p1480_p8 = por %p1479_p13, %p1478_p12 }
 0x24e   : > { %p1476_p6 = pneg %p1475_p3 }
 0x24f   : > { %p1482_p0 = por %p1481_p10, %p1480_p8 }
 0x251   : > { %p1483_p2 = pnand %p1482_p0, %p1476_p6 }
 0x253   : > { %1486 = shalt.err (!%p1483_p2)
}
 0x254   : > { %1338 = dma.vmem_to_hbm [thread:$0]  (%p1933_p11), %s1873_s11, 128, %s1878_s18, %s818_s19  }
 0x255 PF: > { %s868_s28 = sand.u32 1, %s1517_s21   ;;  %p1934_p4 = scmp.ne.s32.totalorder %s1931_s10, 0 }
 0x256   : > { %p1935_p5 = scmp.ge.s32.totalorder %s1529_s24, 2  ;;  %s869_s7 = scalar_lea.sflag [#allocation4], %s868_s28 }
 0x258   : > { %p1346_p7 = pnand %p1935_p5, %p1934_p4 }
 0x25a   : > { %1508 = dma.done.wait (!%p1346_p7), %s869_s7, 1024  }
 0x25b   : > { %1510 = vsyncadd (!%p1346_p7), %s869_s7, 4294966272  ;;  %s878_s16 = scalar_lea.sflag [#allocation7], %s868_s28 }
 0x25c   : > { %1512 = dma.done.wait (!%p1346_p7), %s878_s16, 128  }
 0x25d   : > { %1514 = vsyncadd (!%p1346_p7), %s878_s16, 4294967168  ;;  %p23_p11 = scmp.ge.s32.totalorder %s1601_s27, 4   ;;  %s1936_s21 = smov %s1521_s22 }
 0x25e   : > { %s1937_s22 = smov %s1525_s23  ;;  %s1938_s23 = smov %s1613_s30 }
 0x25f   : > { %s1939_s24 = smov %s1601_s27  ;;  %25 = sbr.rel (!%p23_p11) target bundleno = 7 (0x7), region = 110 }
 0x266   :  { %891 = vsyncpa [#allocation3], 1 }
 0x267   :  { %893 = vsyncpa [#allocation3 + $0x1], 1 }
 0x268   :  { %894 = vsyncpa [#allocation4], 1 }
 0x269   :  { %896 = vsyncpa [#allocation4 + $0x1], 1 }
 0x26a   :  { %897 = vsyncpa [#allocation7], 1 }
 0x26b   :  { %899 = vsyncpa [#allocation7 + $0x1], 1 }

</bundles_post_ra>
